<compile_context>
chip_gen: v7x
topology: tpu7x:2x2x1
jax: 0.10.0
libtpu: 0.0.40
codegen_flags: <defaults>
</compile_context>

<pallas_src>
import numpy as np
import jax
import jax.numpy as jnp
from jax.experimental import pallas as pl
from jax.experimental.pallas import tpu as pltpu


# --------------------------------------------------------------------------- #
# Host-side coefficient computation (identical math to the PyTorch module)
# --------------------------------------------------------------------------- #
def _skrock_coeffs(step_size, inner_iter, eta):
    T_s = lambda s, u: np.cosh(s * np.arccosh(u))
    T_prime_s = lambda s, u: s * np.sinh(s * np.arccosh(u)) / np.sqrt(u ** 2 - 1)
    w0 = 1 + eta / inner_iter ** 2
    w1 = T_s(inner_iter, w0) / T_prime_s(inner_iter, w0)
    mu1 = w1 / w0
    nu1 = inner_iter * w1 / 2
    kappa1 = inner_iter * (w1 / w0)
    inner = []
    for js in range(2, inner_iter + 1):
        mu = 2 * w1 * T_s(js - 1, w0) / T_s(js, w0)
        nu = 2 * w0 * T_s(js - 1, w0) / T_s(js, w0)
        kappa = 1 - nu
        inner.append((float(mu), float(nu), float(kappa)))
    return float(mu1), float(nu1), float(kappa1), inner


def _collapse_affine(step_size, alpha, inner_iter, eta):
    """Collapse the whole SK-ROCK recursion (affine posterior) to out = A*x + B*y + C*randn."""
    mu1, nu1, kappa1, inner = _skrock_coeffs(step_size, inner_iter, eta)
    dt = float(step_size)
    g = 1.0 + float(alpha)                 # posterior(u) = g*u - y
    ns = float(np.sqrt(2.0 * dt))          # noise_std
    # xts_2 = x
    px, py, pn = 1.0, 0.0, 0.0
    # first stage: xts = x - mu1*dt*(g*(x + nu1*ns*n) - y) + kappa1*ns*n
    cx = 1.0 - mu1 * dt * g
    cy = mu1 * dt
    cn = kappa1 * ns - mu1 * dt * g * nu1 * ns
    # remaining stages: xts = (nu - mu*dt*g)*xts + mu*dt*y + kappa*xts_2
    for (mu, nu, kappa) in inner:
        s = nu - mu * dt * g
        nx = s * cx + kappa * px
        ny = s * cy + kappa * py + mu * dt
        nn = s * cn + kappa * pn
        px, py, pn = cx, cy, cn
        cx, cy, cn = nx, ny, nn
    return float(cx), float(cy), float(cn)


# --------------------------------------------------------------------------- #
# Kernels
# --------------------------------------------------------------------------- #
def _make_collapsed_kernel(A, B, C):
    def kernel(x_ref, y_ref, n_ref, o_ref):
        x = x_ref[...].astype(jnp.float32)
        y = y_ref[...].astype(jnp.float32)
        n = n_ref[...].astype(jnp.float32)
        o_ref[...] = (A * x + (B * y + C * n)).astype(o_ref.dtype)
    return kernel


def _make_unrolled_kernel(step_size, alpha, inner_iter, eta):
    """Literal SK-ROCK recursion (kept for future non-linear priors)."""
    mu1, nu1, kappa1, inner = _skrock_coeffs(step_size, inner_iter, eta)
    dt = float(step_size)
    g = 1.0 + float(alpha)
    ns = float(np.sqrt(2.0 * dt))
    nu1n = nu1 * ns        # noise_std folded into the noise coefficients
    kappa1n = kappa1 * ns

    def kernel(x_ref, y_ref, n_ref, o_ref):
        x = x_ref[...].astype(jnp.float32)
        y = y_ref[...].astype(jnp.float32)
        n = n_ref[...].astype(jnp.float32)

        def posterior(u):
            # likelihood.grad(u, y, physics) + alpha * prior.grad(u, sigma)
            return g * u - y

        xts_2 = x
        xts = x - (mu1 * dt) * posterior(x + nu1n * n) + kappa1n * n
        # TODO(synk): a learned-denoiser posterior would be a network call and
        # cannot live inside this kernel; only the analytic form is unrolled.
        for (mu, nu, kappa) in inner:
            xts_1 = xts
            xts = -(mu * dt) * posterior(xts) + nu * xts + kappa * xts_2
            xts_2 = xts_1
        o_ref[...] = xts.astype(o_ref.dtype)
    return kernel


# --------------------------------------------------------------------------- #
# Wrapper
# --------------------------------------------------------------------------- #
def skrock_step(x_nchw, y_nchw, randn_nchw, *, step_size, alpha, inner_iter, eta,
                sigma, collapse=True, io_dtype=jnp.float32):
    """One SK-ROCK sampling step. x, y, randn are NCHW; returns NCHW."""
    B, C, H, W = x_nchw.shape
    N = B * C * H * W
    _ = sigma  # carried for API parity; unused by the synthetic Tikhonov prior
    assert N % 1024 == 0, "total element count must be a multiple of 8*128"

    # Flatten to a lane-aligned (M, LW) slab; consecutive-row blocks are
    # contiguous in HBM -> one big DMA per block.
    LW = next(lw for lw in (1024, 512, 256, 128) if N % (8 * lw) == 0)
    M = N // LW                      # multiple of 8 by construction

    # Pick block rows: largest multiple of 8 dividing M with block <= ~1 MiB f32.
    target_elems = 256 * 1024        # ~1 MiB per f32 operand block
    m8 = M // 8
    cap_d = max(1, min(m8, target_elems // (8 * LW)))
    d = next(dd for dd in range(cap_d, 0, -1) if m8 % dd == 0)
    TR = 8 * d
    grid = (M // TR,)

    x2 = x_nchw.reshape(M, LW).astype(io_dtype)
    y2 = y_nchw.reshape(M, LW).astype(io_dtype)
    n2 = randn_nchw.reshape(M, LW).astype(io_dtype)

    if collapse:
        A, Bc, Cc = _collapse_affine(step_size, alpha, inner_iter, eta)
        kernel = _make_collapsed_kernel(A, Bc, Cc)
    else:
        kernel = _make_unrolled_kernel(step_size, alpha, inner_iter, eta)

    specs = [pl.BlockSpec((TR, LW), lambda i: (i, 0)) for _ in range(4)]
    out2 = pl.pallas_call(
        kernel,
        out_shape=jax.ShapeDtypeStruct((M, LW), io_dtype),
        grid=grid,
        in_specs=specs[:3],
        out_specs=specs[3],
        input_output_aliases={0: 0},   # overwrite the sample in place
        compiler_params=pltpu.CompilerParams(dimension_semantics=("parallel",)),
    )(x2, y2, n2)
    return out2.reshape(B, C, H, W).astype(x_nchw.dtype)


# --------------------------------------------------------------------------- #
# Pure-numpy reference mirroring the PyTorch module exactly
# --------------------------------------------------------------------------- #
def _skrock_reference(x, y, randn, *, step_size, alpha, inner_iter, eta, sigma):
    mu1, nu1, kappa1, inner_coeffs = _skrock_coeffs(step_size, inner_iter, eta)
    posterior = lambda u: (u - y) + alpha * u
    noise = np.sqrt(2 * step_size) * randn
    xts_2 = x.copy()
    xts = x - mu1 * step_size * posterior(x + nu1 * noise) + kappa1 * noise
    for (mu, nu, kappa) in inner_coeffs:
        xts_1 = xts.copy()
        xts = -mu * step_size * posterior(xts) + nu * xts + kappa * xts_2
        xts_2 = xts_1
    return xts


if __name__ == "__main__":
    STEP_SIZE = 0.01
    ALPHA = 0.9
    INNER_ITER = 5
    ETA = 0.05
    SIGMA = 0.1

    key = jax.random.PRNGKey(0)
    kx, ky, kn = jax.random.split(key, 3)
    B, C, H, W = 2, 4, 16, 16
    x = jax.random.normal(kx, (B, C, H, W), dtype=jnp.float32)
    y = jax.random.normal(ky, (B, C, H, W), dtype=jnp.float32)
    # PyTorch draws noise inside forward with torch.randn_like; here we draw it
    # deterministically in the wrapper and pass it in.
    randn = jax.random.normal(kn, (B, C, H, W), dtype=jnp.float32)

    ref = _skrock_reference(
        np.asarray(x), np.asarray(y), np.asarray(randn),
        step_size=STEP_SIZE, alpha=ALPHA, inner_iter=INNER_ITER, eta=ETA, sigma=SIGMA,
    )

    # Fast (collapsed affine) path — the default.
    out_fast = jax.block_until_ready(skrock_step(
        x, y, randn, step_size=STEP_SIZE, alpha=ALPHA, inner_iter=INNER_ITER,
        eta=ETA, sigma=SIGMA, collapse=True))
    np.testing.assert_allclose(np.asarray(out_fast), ref, rtol=1e-4, atol=1e-5)

    # Literal unrolled recursion path (kept for future non-linear priors).
    out_gen = jax.block_until_ready(skrock_step(
        x, y, randn, step_size=STEP_SIZE, alpha=ALPHA, inner_iter=INNER_ITER,
        eta=ETA, sigma=SIGMA, collapse=False))
    np.testing.assert_allclose(np.asarray(out_gen), ref, rtol=1e-4, atol=1e-5)

    print("KERNEL_OK")
</pallas_src>

<mosaic_0001>
module attributes {stable_mosaic.version = 11 : i64} {
  func.func @kernel(%arg0: i32, %arg1: memref<8x256xf32, #tpu.memory_space<vmem>>, %arg2: memref<8x256xf32, #tpu.memory_space<vmem>>, %arg3: memref<8x256xf32, #tpu.memory_space<vmem>>, %arg4: memref<8x256xf32, #tpu.memory_space<vmem>>) attributes {dimension_semantics = [#tpu.dimension_semantics<parallel>], iteration_bounds = array<i64: 1>, scalar_prefetch = 0 : i64, scratch_operands = 0 : i64, tpu.core_type = #tpu.core_type<tc>, window_params = [{transform_indices = @transform_0, window_bounds = array<i64: 8, 256>}, {transform_indices = @transform_1, window_bounds = array<i64: 8, 256>}, {transform_indices = @transform_2, window_bounds = array<i64: 8, 256>}, {transform_indices = @transform_3, window_bounds = array<i64: 8, 256>}]} {
    %c0 = arith.constant 0 : index
    %c0_0 = arith.constant 0 : index
    %0 = vector.load %arg1[%c0, %c0_0] : memref<8x256xf32, #tpu.memory_space<vmem>>, vector<8x256xf32>
    %c0_1 = arith.constant 0 : index
    %c0_2 = arith.constant 0 : index
    %1 = vector.load %arg2[%c0_1, %c0_2] : memref<8x256xf32, #tpu.memory_space<vmem>>, vector<8x256xf32>
    %c0_3 = arith.constant 0 : index
    %c0_4 = arith.constant 0 : index
    %2 = vector.load %arg3[%c0_3, %c0_4] : memref<8x256xf32, #tpu.memory_space<vmem>>, vector<8x256xf32>
    %cst = arith.constant 0.981059193 : f32
    %3 = vector.broadcast %cst : f32 to vector<8x256xf32>
    %4 = arith.mulf %3, %0 : vector<8x256xf32>
    %cst_5 = arith.constant 0.00996884331 : f32
    %5 = vector.broadcast %cst_5 : f32 to vector<8x256xf32>
    %6 = arith.mulf %5, %1 : vector<8x256xf32>
    %cst_6 = arith.constant 0.140485391 : f32
    %7 = vector.broadcast %cst_6 : f32 to vector<8x256xf32>
    %8 = arith.mulf %7, %2 : vector<8x256xf32>
    %9 = arith.addf %6, %8 : vector<8x256xf32>
    %10 = arith.addf %4, %9 : vector<8x256xf32>
    %c0_7 = arith.constant 0 : index
    %c0_8 = arith.constant 0 : index
    %11 = vector.load %arg4[%c0_7, %c0_8] : memref<8x256xf32, #tpu.memory_space<vmem>>, vector<8x256xf32>
    tpu.vector_store %arg4[%c0_7, %c0_8], %10 {strides = array<i32>} : memref<8x256xf32, #tpu.memory_space<vmem>>, vector<8x256xf32>,
    return
  }
  func.func @transform_0(%arg0: i32) -> (i32, i32) {
    %c0_i32 = arith.constant 0 : i32
    %c0_i32_0 = arith.constant 0 : i32
    return %arg0, %c0_i32 : i32, i32
  }
  func.func @transform_1(%arg0: i32) -> (i32, i32) {
    %c0_i32 = arith.constant 0 : i32
    %c0_i32_0 = arith.constant 0 : i32
    return %arg0, %c0_i32 : i32, i32
  }
  func.func @transform_2(%arg0: i32) -> (i32, i32) {
    %c0_i32 = arith.constant 0 : i32
    %c0_i32_0 = arith.constant 0 : i32
    return %arg0, %c0_i32 : i32, i32
  }
  func.func @transform_3(%arg0: i32) -> (i32, i32) {
    %c0_i32 = arith.constant 0 : i32
    %c0_i32_0 = arith.constant 0 : i32
    return %arg0, %c0_i32 : i32, i32
  }
}

</mosaic_0001>

<bundles_post_ra>
// kernel: tpu_custom_call.1
= control target key start
LH: loop header
LB: loop body
LE: loop exit
PB: predicated region body
PF: predicated region fallthrough
CT: control target
= control target key end

     0   :  { %8 = vsyncpa [#allocation3], 0  ;;  %s168_s0 = inlined_call_operand.hbm [shape: f32[8,256], index: 0, kind: input, shape index: {}, may-alias: {0,3}]   ;;  %s169_s1 = inlined_call_operand.vmem [shape: f32[8,256], index: 1, kind: input, shape index: {}]   ;;  %s170_s2 = inlined_call_operand.vmem [shape: f32[8,256], index: 2, kind: input, shape index: {}]   ;;  %s171_s3 = inlined_call_operand.hbm [shape: f32[8,256], index: 3, kind: output, shape index: {}, may-alias: {0,3}]  }
   0x1   :  { %9 = vsyncpa [#allocation4], 0  ;;  %s110_s12 = smov [#allocation2]   ;;  %s62_s16 = scalar_lea.hbm %s168_s0, 256 }
   0x2   :  { %s16_s13 = sshll.u32 %s110_s12, 4  ;;  %p63_p0 = scmp.ne.s32.totalorder %s168_s0, %s62_s16  ;;  %s17_s13 = int_to_ptr.vmem [resolvable:$true] %s16_s13 }
   0x3   :  { %p66_p1 = scmp.lt.u32.totalorder %s62_s16, %s168_s0 }
   0x5   :  { %p68_p2 = pnand %p66_p1, %p63_p0 }
   0x7   :  { %71 = shalt.err (!%p68_p2)
}
   0x8   :  { %s72_s21 = scalar_lea.vmem %s17_s13, 256  ;;  %p77_p4 = scmp.lt.s32.totalorder %s17_s13, %s17_s13 }
   0x9   :  { %p73_p3 = scmp.ne.s32.totalorder %s17_s13, %s72_s21  ;;  %p78_p5 = scmp.lt.s32.totalorder %s72_s21, %s72_s21 }
   0xb   :  { %p79_p6 = por %p78_p5, %p77_p4 }
   0xd   :  { %p80_p7 = pnand %p79_p6, %p73_p3 }
   0xf   :  { %83 = shalt.err (!%p80_p7)
}
  0x10   :  { %19 = dma.hbm_to_vmem [thread:$0]  %s168_s0, 256, %s17_s13, [#allocation3]  }
  0x11   :  { %106 = dma.done.wait [#allocation3], 256  }
  0x12   :  { %107 = vsyncadd [#allocation3], 4294967040  ;;  %v27_v0 = vld [vmem:[#allocation2] sm:$0xff]  ;;  %v28_v6 = vld [vmem:[#allocation2 + $0x8] sm:$0xff]  ;;  %s111_s4 = smov [#allocation5]  }
  0x13   :  { %v29_v1 = vld [vmem:[%s169_s1] sm:$0xff]  ;;  %v33_v3 = vmul.f32 0.9810592, %v27_v0  ;;  %v30_v7 = vld [vmem:[%s169_s1 + $0x8] sm:$0xff]  ;;  %v34_v10 = vmul.f32 0.9810592, %v28_v6 }
  0x14   :  { %v31_v2 = vld [vmem:[%s170_s2] sm:$0xff]  ;;  %v35_v4 = vmul.f32 0.009968843, %v29_v1  ;;  %v32_v8 = vld [vmem:[%s170_s2 + $0x8] sm:$0xff]  ;;  %v36_v11 = vmul.f32 0.009968843, %v30_v7 }
  0x15   :  { %v37_v5 = vmul.f32 0.14048539, %v31_v2  ;;  %v38_v12 = vmul.f32 0.14048539, %v32_v8  ;;  %s51_s5 = sshll.u32 %s111_s4, 4  ;;  %s52_s5 = int_to_ptr.vmem [resolvable:$true] %s51_s5 }
  0x16   :  { %s84_s6 = scalar_lea.vmem %s52_s5, 256  ;;  %p89_p9 = scmp.lt.s32.totalorder %s52_s5, %s52_s5 }
  0x17   :  { %v39_v9 = vadd.f32 %v37_v5, %v35_v4  ;;  %v40_v14 = vadd.f32 %v38_v12, %v36_v11  ;;  %p85_p8 = scmp.ne.s32.totalorder %s52_s5, %s84_s6  ;;  %p90_p10 = scmp.lt.s32.totalorder %s84_s6, %s84_s6 }
  0x19   :  { %v41_v13 = vadd.f32 %v39_v9, %v33_v3  ;;  %v42_v15 = vadd.f32 %v40_v14, %v34_v10  ;;  %p91_p11 = por %p90_p10, %p89_p9 }
  0x1b   :  { %43 = vst [vmem:[#allocation5] sm:$0xff] %v41_v13  ;;  %44 = vst [vmem:[#allocation5 + $0x8] sm:$0xff] %v42_v15  ;;  %p92_p12 = pnand %p91_p11, %p85_p8 }
  0x1d   :  { %95 = shalt.err (!%p92_p12)
}
  0x1e   :  { %s96_s7 = scalar_lea.hbm %s171_s3, 256 }
  0x1f   :  { %p97_p13 = scmp.ne.s32.totalorder %s171_s3, %s96_s7  ;;  %p100_p0 = scmp.lt.u32.totalorder %s96_s7, %s171_s3 }
  0x21   :  { %p102_p1 = pnand %p100_p0, %p97_p13 }
  0x23   :  { %105 = shalt.err (!%p102_p1)
}
  0x24   :  { %54 = dma.vmem_to_hbm [thread:$0]  %s52_s5, 256, %s171_s3, [#allocation4]  }
  0x25   :  { %108 = dma.done.wait [#allocation4], 256  }
  0x26   :  { %109 = vsyncadd [#allocation4], 4294967040 }
  0x27   :  { %58 = vsyncpa [#allocation3], 1 }
  0x28   :  { %59 = vsyncpa [#allocation4], 1 }

</bundles_post_ra>
